<compile_context>
chip_gen: v5e
topology: v5e:2x2
jax: 0.10.0
libtpu: 0.0.40
codegen_flags: <defaults>
</compile_context>

<pallas_src>
import functools
import math

import jax
import jax.numpy as jnp
from jax.experimental import pallas as pl
from jax.experimental.pallas import tpu as pltpu

EPS = 1e-5  # nn.InstanceNorm3d default eps (affine=False, biased variance)


# --------------------------------------------------------------------------- #
# Hardware-aware sizing helpers
# --------------------------------------------------------------------------- #

@functools.lru_cache(maxsize=1)
def _vmem_capacity_bytes():
    try:
        cap = getattr(pltpu.get_tpu_info(), "vmem_capacity_bytes", None)
        if cap:
            return int(cap)
    except Exception:
        pass
    return 64 * 1024 * 1024  # conservative default (v7x per-TC VMEM)


def _round_down(v, m):
    return (v // m) * m


def _choose_tile(S, F_g, F_l, F_int, budget_bytes):
    """Largest multiple-of-128 lane tile within the working-set budget (<= S)."""
    if S <= 128:
        return S
    per_col = 4 * max(
        2 * (F_g + F_l + 1) + 2 * F_int + 6,   # passes 1-2: dbl-buffered g/x/p + temps
        2 * (2 * F_g + 1) + 2,                 # pass 3: dbl-buffered g/out/p
    )
    ts = _round_down(max(budget_bytes // per_col, 128), 128)
    ts = min(max(ts, 128), _round_down(S, 128))
    return ts


# --------------------------------------------------------------------------- #
# Fused path kernel: one instance fully resident in VMEM (grid = (N,))
# --------------------------------------------------------------------------- #

def _fused_kernel(g_ref, x_ref, wg_ref, bg_ref, wx_ref, bx_ref, wp_ref, bp_ref,
                  out_ref, *, s_total):
    inv = jnp.float32(1.0 / s_total)
    g = g_ref[0].astype(jnp.float32)                                    # (F_g, S)
    x = x_ref[0].astype(jnp.float32)                                    # (F_l, S)

    def branch(w, b, v):
        h = jnp.dot(w, v, preferred_element_type=jnp.float32) + b       # (F_int, S)
        mean = jnp.sum(h, axis=-1, keepdims=True) * inv
        c = h - mean
        var = jnp.sum(c * c, axis=-1, keepdims=True) * inv              # exact 2-pass
        return jnp.maximum(c * jax.lax.rsqrt(var + EPS), 0.0)           # IN + ReLU

    g1 = branch(wg_ref[...], bg_ref[...], g)
    x1 = branch(wx_ref[...], bx_ref[...], x)

    # psi 1x1x1 conv (F_int -> 1) as VPU multiply + sublane reduce (MXU M=1 is wasteful)
    p = jnp.sum((g1 + x1) * wp_ref[...], axis=0, keepdims=True) + bp_ref[...]   # (1, S)
    pm = jnp.sum(p, axis=-1, keepdims=True) * inv
    pc = p - pm
    pv = jnp.sum(pc * pc, axis=-1, keepdims=True) * inv
    psi1 = jax.nn.sigmoid(pc * jax.lax.rsqrt(pv + EPS)) + 1.0           # sigmoid>=0 -> ReLU dropped

    out_ref[0] = (g * psi1).astype(out_ref.dtype)                       # g*psi + g == g*(psi+1)


# --------------------------------------------------------------------------- #
# Tiled path kernels (tiles are channel-first (C, TS), S on the lane axis)
# --------------------------------------------------------------------------- #

def _stats_gx_kernel(g_ref, x_ref, wg_ref, bg_ref, wx_ref, bx_ref,
                     sg_ref, sx_ref, sum_g, sq_g, sum_x, sq_x, *, s_total, ts):
    """Pass 1: per-instance mean/rstd of the two conv-branch pre-activations."""
    s = pl.program_id(1)

    @pl.when(s == 0)
    def _():
        sum_g[...] = jnp.zeros_like(sum_g)
        sq_g[...] = jnp.zeros_like(sq_g)
        sum_x[...] = jnp.zeros_like(sum_x)
        sq_x[...] = jnp.zeros_like(sq_x)

    # mask padding lanes of the (possibly partial) last tile
    valid = s_total - s * ts
    mask = jax.lax.broadcasted_iota(jnp.int32, (1, ts), 1) < valid      # (1, ts)

    g1 = jnp.dot(wg_ref[...], g_ref[0], preferred_element_type=jnp.float32) + bg_ref[...]
    x1 = jnp.dot(wx_ref[...], x_ref[0], preferred_element_type=jnp.float32) + bx_ref[...]
    g1 = jnp.where(mask, g1, 0.0)
    x1 = jnp.where(mask, x1, 0.0)

    sum_g[...] += jnp.sum(g1, axis=-1, keepdims=True)
    sq_g[...] += jnp.sum(g1 * g1, axis=-1, keepdims=True)
    sum_x[...] += jnp.sum(x1, axis=-1, keepdims=True)
    sq_x[...] += jnp.sum(x1 * x1, axis=-1, keepdims=True)

    @pl.when(s == pl.num_programs(1) - 1)
    def _():
        inv = jnp.float32(1.0 / s_total)
        for sm, sq, out_r in ((sum_g, sq_g, sg_ref), (sum_x, sq_x, sx_ref)):
            mean = sm[...] * inv
            var = jnp.maximum(sq[...] * inv - mean * mean, 0.0)
            out_r[0, :, 0:1] = mean
            out_r[0, :, 1:2] = jax.lax.rsqrt(var + EPS)


def _psi_kernel(sg_ref, sx_ref, g_ref, x_ref, wg_ref, bg_ref, wx_ref, bx_ref,
                wp_ref, bp_ref, p_ref, sp_ref, sum_p, sq_p, *, s_total, ts):
    """Pass 2: psi pre-activation row (cached to HBM) + its per-instance stats."""
    s = pl.program_id(1)

    @pl.when(s == 0)
    def _():
        sum_p[...] = jnp.zeros_like(sum_p)
        sq_p[...] = jnp.zeros_like(sq_p)

    sg = sg_ref[0]                                                       # (F_int, 2)
    sx = sx_ref[0]
    g1 = jnp.dot(wg_ref[...], g_ref[0], preferred_element_type=jnp.float32) + bg_ref[...]
    g1 = jnp.maximum((g1 - sg[:, 0:1]) * sg[:, 1:2], 0.0)                # IN + ReLU
    x1 = jnp.dot(wx_ref[...], x_ref[0], preferred_element_type=jnp.float32) + bx_ref[...]
    x1 = jnp.maximum((x1 - sx[:, 0:1]) * sx[:, 1:2], 0.0)
    p = jnp.sum((g1 + x1) * wp_ref[...], axis=0, keepdims=True) + bp_ref[...]    # (1, ts)

    p_ref[0] = p  # cache for pass 3 (padding lanes of the last tile are masked on store)

    valid = s_total - s * ts
    mask = jax.lax.broadcasted_iota(jnp.int32, (1, ts), 1) < valid
    pm = jnp.where(mask, p, 0.0)
    sum_p[...] += jnp.sum(pm, axis=-1, keepdims=True)
    sq_p[...] += jnp.sum(pm * pm, axis=-1, keepdims=True)

    @pl.when(s == pl.num_programs(1) - 1)
    def _():
        inv = jnp.float32(1.0 / s_total)
        mean = sum_p[...] * inv
        var = jnp.maximum(sq_p[...] * inv - mean * mean, 0.0)
        sp_ref[0, :, 0:1] = mean
        sp_ref[0, :, 1:2] = jax.lax.rsqrt(var + EPS)


def _apply_kernel(sp_ref, g_ref, p_ref, out_ref):
    """Pass 3: normalize the cached psi row, gate, write output (no x / matmuls)."""
    sp = sp_ref[0]                                                       # (1, 2)
    p = (p_ref[0] - sp[:, 0:1]) * sp[:, 1:2]                             # InstanceNorm(1)
    psi1 = jax.nn.sigmoid(p) + 1.0
    out_ref[0] = (g_ref[0] * psi1).astype(out_ref.dtype)                 # broadcasts over F_g


# --------------------------------------------------------------------------- #
# Wrapper
# --------------------------------------------------------------------------- #

@functools.partial(jax.jit, static_argnames=("force_tiled", "tile_override"))
def swift_attn_gate(g, x, wg, bg, wx, bx, wp, bp, *, force_tiled=False,
                    tile_override=None):
    # g: (N, F_g, D, H, W), x: (N, F_l, D, H, W)  -- PyTorch NCDHW.
    # wg: (F_int, F_g), bg: (F_int, 1), wx: (F_int, F_l), bx: (F_int, 1),
    # wp: (F_int, 1),   bp: (1, 1)
    N, F_g = g.shape[:2]
    F_l = x.shape[1]
    F_int = wg.shape[0]
    S = math.prod(g.shape[2:])

    # Native memory order -> (N, C, S); reshape only, no HBM transpose.
    g2 = g.reshape(N, F_g, S)
    x2 = x.reshape(N, F_l, S)

    cap = _vmem_capacity_bytes()
    vmem_limit = int(cap * 0.7)

    def cparams(sem):
        return pltpu.CompilerParams(dimension_semantics=sem,
                                    vmem_limit_bytes=vmem_limit)

    # ---------------- fused fast path: one instance resident in VMEM ---------
    fused_bytes = 4 * S * (2 * (2 * F_g + F_l) + 3 * F_int + 6)
    if (not force_tiled) and fused_bytes <= int(cap * 0.4):
        full = lambda shape: pl.BlockSpec(shape, lambda n: (0,) * len(shape))
        act = lambda C: pl.BlockSpec((1, C, S), lambda n: (n, 0, 0))
        out2 = pl.pallas_call(
            functools.partial(_fused_kernel, s_total=S),
            out_shape=jax.ShapeDtypeStruct((N, F_g, S), g.dtype),
            grid_spec=pltpu.PrefetchScalarGridSpec(
                num_scalar_prefetch=0,
                grid=(N,),
                in_specs=[act(F_g), act(F_l),
                          full((F_int, F_g)), full((F_int, 1)),
                          full((F_int, F_l)), full((F_int, 1)),
                          full((F_int, 1)), full((1, 1))],
                out_specs=act(F_g)),
            compiler_params=cparams(("parallel",)),
        )(g2, x2, wg, bg, wx, bx, wp, bp)
        return out2.reshape(g.shape)

    # ---------------- tiled 3-pass path --------------------------------------
    TS = tile_override if tile_override is not None else \
        _choose_tile(S, F_g, F_l, F_int, cap // 4)
    nt = pl.cdiv(S, TS)

    w_spec = lambda shape: pl.BlockSpec(shape, lambda n, s: (0, 0))         # weights/bias
    act_spec = lambda C: pl.BlockSpec((1, C, TS), lambda n, s: (n, 0, s))   # activations
    st_spec = lambda C: pl.BlockSpec((1, C, 2), lambda n, s: (n, 0, 0))     # per-inst stats

    # Pass 1: stats of the two conv-branch pre-activations.
    stats_g, stats_x = pl.pallas_call(
        functools.partial(_stats_gx_kernel, s_total=S, ts=TS),
        out_shape=(jax.ShapeDtypeStruct((N, F_int, 2), jnp.float32),
                   jax.ShapeDtypeStruct((N, F_int, 2), jnp.float32)),
        grid_spec=pltpu.PrefetchScalarGridSpec(
            num_scalar_prefetch=0,
            grid=(N, nt),
            in_specs=[act_spec(F_g), act_spec(F_l),
                      w_spec((F_int, F_g)), w_spec((F_int, 1)),
                      w_spec((F_int, F_l)), w_spec((F_int, 1))],
            out_specs=[st_spec(F_int), st_spec(F_int)],
            scratch_shapes=[pltpu.VMEM((F_int, 1), jnp.float32)] * 4),
        compiler_params=cparams(("parallel", "arbitrary")),
    )(g2, x2, wg, bg, wx, bx)

    # Pass 2: psi pre-activation row (cached to HBM) + its stats.
    p_cache, stats_p = pl.pallas_call(
        functools.partial(_psi_kernel, s_total=S, ts=TS),
        out_shape=(jax.ShapeDtypeStruct((N, 1, S), jnp.float32),
                   jax.ShapeDtypeStruct((N, 1, 2), jnp.float32)),
        grid_spec=pltpu.PrefetchScalarGridSpec(
            num_scalar_prefetch=0,
            grid=(N, nt),
            in_specs=[st_spec(F_int), st_spec(F_int),
                      act_spec(F_g), act_spec(F_l),
                      w_spec((F_int, F_g)), w_spec((F_int, 1)),
                      w_spec((F_int, F_l)), w_spec((F_int, 1)),
                      w_spec((F_int, 1)), w_spec((1, 1))],
            out_specs=[act_spec(1), st_spec(1)],
            scratch_shapes=[pltpu.VMEM((1, 1), jnp.float32)] * 2),
        compiler_params=cparams(("parallel", "arbitrary")),
    )(stats_g, stats_x, g2, x2, wg, bg, wx, bx, wp, bp)

    # Pass 3: gate with the cached psi row only (no x read, no matmuls).
    out2 = pl.pallas_call(
        _apply_kernel,
        out_shape=jax.ShapeDtypeStruct((N, F_g, S), g.dtype),
        grid_spec=pltpu.PrefetchScalarGridSpec(
            num_scalar_prefetch=0,
            grid=(N, nt),
            in_specs=[st_spec(1), act_spec(F_g), act_spec(1)],
            out_specs=act_spec(F_g)),
        compiler_params=cparams(("parallel", "parallel")),
    )(stats_p, g2, p_cache)

    return out2.reshape(g.shape)


# --------------------------------------------------------------------------- #
# Parameter init (PyTorch conv orientation: weight = (C_out, C_in)) + reference
# --------------------------------------------------------------------------- #

def _make_grouped_weight(key, c_in, c_out, groups):
    """Dense (C_out, C_in) matrix equivalent to a grouped 1x1x1 Conv3d weight."""
    cig, cog = c_in // groups, c_out // groups
    wk = jax.random.normal(key, (groups, cog, cig), jnp.float32) * 0.1
    w = jnp.zeros((c_out, c_in), jnp.float32)
    for gi in range(groups):
        w = w.at[gi * cog:(gi + 1) * cog, gi * cig:(gi + 1) * cig].set(wk[gi])
    return w


def init_params(key, F_g, F_l, F_int, num_groups=1):
    k = jax.random.split(key, 6)
    return dict(
        wg=_make_grouped_weight(k[0], F_g, F_int, num_groups),           # (F_int, F_g)
        bg=jax.random.normal(k[1], (F_int, 1), jnp.float32) * 0.1,
        wx=_make_grouped_weight(k[2], F_l, F_int, num_groups),           # (F_int, F_l)
        bx=jax.random.normal(k[3], (F_int, 1), jnp.float32) * 0.1,
        wp=jax.random.normal(k[4], (F_int, 1), jnp.float32) * 0.1,
        bp=jax.random.normal(k[5], (1, 1), jnp.float32) * 0.1,
    )


def _reference(g, x, wg, bg, wx, bx, wp, bp):
    """Pure-JAX reference of the PyTorch forward."""
    N, F_g = g.shape[:2]
    S = math.prod(g.shape[2:])
    gn = g.reshape(N, F_g, S)
    xn = x.reshape(N, x.shape[1], S)

    def inorm(v):  # (N, C, S): normalize over S per channel per instance
        m = jnp.mean(v, axis=2, keepdims=True)
        va = jnp.mean((v - m) ** 2, axis=2, keepdims=True)
        return (v - m) / jnp.sqrt(va + EPS)

    g1 = jax.nn.relu(inorm(jnp.einsum("fc,ncs->nfs", wg, gn) + bg[None]))
    x1 = jax.nn.relu(inorm(jnp.einsum("fc,ncs->nfs", wx, xn) + bx[None]))
    p = jnp.einsum("fo,nfs->nos", wp, g1 + x1) + bp[None]
    p = jax.nn.relu(jax.nn.sigmoid(inorm(p)))
    out = gn * p + gn
    return out.reshape(g.shape)


if __name__ == "__main__":
    key = jax.random.PRNGKey(0)
    k_g, k_x, k_p, k_g2, k_x2 = jax.random.split(key, 5)

    N, F_g, F_l, F_int = 2, 8, 8, 4
    params = init_params(k_p, F_g, F_l, F_int, num_groups=1)

    # 1) Fused VMEM-resident path (small instance, S = 8*8*8 = 512).
    D = H = W = 8
    g = jax.random.normal(k_g, (N, F_g, D, H, W), jnp.float32)
    x = jax.random.normal(k_x, (N, F_l, D, H, W), jnp.float32)
    out = swift_attn_gate(g, x, params["wg"], params["bg"], params["wx"],
                          params["bx"], params["wp"], params["bp"])
    out = jax.block_until_ready(out)
    ref = _reference(g, x, **params)
    assert out.shape == g.shape
    assert jnp.allclose(out, ref, atol=1e-4, rtol=1e-4), \
        float(jnp.max(jnp.abs(out - ref)))

    # 2) Tiled 3-pass path with masked partial last tile (S = 7*7*7 = 343).
    D = H = W = 7
    g = jax.random.normal(k_g2, (N, F_g, D, H, W), jnp.float32)
    x = jax.random.normal(k_x2, (N, F_l, D, H, W), jnp.float32)
    out = swift_attn_gate(g, x, params["wg"], params["bg"], params["wx"],
                          params["bx"], params["wp"], params["bp"],
                          force_tiled=True, tile_override=128)
    out = jax.block_until_ready(out)
    ref = _reference(g, x, **params)
    assert out.shape == g.shape
    assert jnp.allclose(out, ref, atol=1e-4, rtol=1e-4), \
        float(jnp.max(jnp.abs(out - ref)))

    print("KERNEL_OK")
</pallas_src>

<mosaic_0001>
module attributes {stable_mosaic.version = 11 : i64} {
  func.func @_fused_kernel(%arg0: i32, %arg1: memref<1x8x512xf32, #tpu.memory_space<vmem>>, %arg2: memref<1x8x512xf32, #tpu.memory_space<vmem>>, %arg3: memref<4x8xf32, #tpu.memory_space<vmem>>, %arg4: memref<4x1xf32, #tpu.memory_space<vmem>>, %arg5: memref<4x8xf32, #tpu.memory_space<vmem>>, %arg6: memref<4x1xf32, #tpu.memory_space<vmem>>, %arg7: memref<4x1xf32, #tpu.memory_space<vmem>>, %arg8: memref<1x1xf32, #tpu.memory_space<vmem>>, %arg9: memref<1x8x512xf32, #tpu.memory_space<vmem>>) attributes {dimension_semantics = [#tpu.dimension_semantics<parallel>], iteration_bounds = array<i64: 2>, scalar_prefetch = 0 : i64, scratch_operands = 0 : i64, tpu.core_type = #tpu.core_type<tc>, window_params = [{transform_indices = @transform_0, window_bounds = array<i64: 1, 8, 512>}, {transform_indices = @transform_1, window_bounds = array<i64: 1, 8, 512>}, {pipeline_mode = #tpu.pipeline_mode<synchronous>, transform_indices = @transform_2, window_bounds = array<i64: 4, 8>}, {pipeline_mode = #tpu.pipeline_mode<synchronous>, transform_indices = @transform_3, window_bounds = array<i64: 4, 1>}, {pipeline_mode = #tpu.pipeline_mode<synchronous>, transform_indices = @transform_4, window_bounds = array<i64: 4, 8>}, {pipeline_mode = #tpu.pipeline_mode<synchronous>, transform_indices = @transform_5, window_bounds = array<i64: 4, 1>}, {pipeline_mode = #tpu.pipeline_mode<synchronous>, transform_indices = @transform_6, window_bounds = array<i64: 4, 1>}, {pipeline_mode = #tpu.pipeline_mode<synchronous>, transform_indices = @transform_7, window_bounds = array<i64: 1, 1>}, {transform_indices = @transform_8, window_bounds = array<i64: 1, 8, 512>}]} {
    %c0 = arith.constant 0 : index
    %c0_0 = arith.constant 0 : index
    %c0_1 = arith.constant 0 : index
    %0 = vector.load %arg1[%c0, %c0_0, %c0_1] : memref<1x8x512xf32, #tpu.memory_space<vmem>>, vector<1x8x512xf32>
    %1 = vector.shape_cast %0 : vector<1x8x512xf32> to vector<8x512xf32>
    %c0_2 = arith.constant 0 : index
    %c0_3 = arith.constant 0 : index
    %c0_4 = arith.constant 0 : index
    %2 = vector.load %arg2[%c0_2, %c0_3, %c0_4] : memref<1x8x512xf32, #tpu.memory_space<vmem>>, vector<1x8x512xf32>
    %3 = vector.shape_cast %2 : vector<1x8x512xf32> to vector<8x512xf32>
    %c0_5 = arith.constant 0 : index
    %c0_6 = arith.constant 0 : index
    %4 = vector.load %arg3[%c0_5, %c0_6] : memref<4x8xf32, #tpu.memory_space<vmem>>, vector<4x8xf32>
    %c0_7 = arith.constant 0 : index
    %c0_8 = arith.constant 0 : index
    %5 = vector.load %arg4[%c0_7, %c0_8] : memref<4x1xf32, #tpu.memory_space<vmem>>, vector<4x1xf32>
    %cst = arith.constant dense<0.000000e+00> : vector<4x512xf32>
    %6 = tpu.matmul %4, %1, %cst {dimension_numbers = #tpu.dot_dimension_numbers<[1], [0], [0], [1], [0, 0, 1, 1], [], []>} : vector<4x8xf32>, vector<8x512xf32>, vector<4x512xf32> -> vector<4x512xf32>
    %7 = vector.broadcast %5 : vector<4x1xf32> to vector<4x512xf32>
    %8 = arith.addf %6, %7 : vector<4x512xf32>
    %cst_9 = arith.constant dense<0.000000e+00> : vector<4xf32>
    %9 = vector.multi_reduction <add>, %8, %cst_9 [1] : vector<4x512xf32> to vector<4xf32>
    %10 = vector.shape_cast %9 : vector<4xf32> to vector<4x1xf32>
    %cst_10 = arith.constant 0.001953125 : f32
    %11 = vector.broadcast %cst_10 : f32 to vector<4x1xf32>
    %12 = arith.mulf %10, %11 : vector<4x1xf32>
    %13 = vector.broadcast %12 : vector<4x1xf32> to vector<4x512xf32>
    %14 = arith.subf %8, %13 : vector<4x512xf32>
    %15 = arith.mulf %14, %14 : vector<4x512xf32>
    %cst_11 = arith.constant dense<0.000000e+00> : vector<4xf32>
    %16 = vector.multi_reduction <add>, %15, %cst_11 [1] : vector<4x512xf32> to vector<4xf32>
    %17 = vector.shape_cast %16 : vector<4xf32> to vector<4x1xf32>
    %cst_12 = arith.constant 0.001953125 : f32
    %18 = vector.broadcast %cst_12 : f32 to vector<4x1xf32>
    %19 = arith.mulf %17, %18 : vector<4x1xf32>
    %cst_13 = arith.constant 9.99999974E-6 : f32
    %20 = vector.broadcast %cst_13 : f32 to vector<4x1xf32>
    %21 = arith.addf %19, %20 : vector<4x1xf32>
    %22 = math.rsqrt %21 : vector<4x1xf32>
    %23 = vector.broadcast %22 : vector<4x1xf32> to vector<4x512xf32>
    %24 = arith.mulf %14, %23 : vector<4x512xf32>
    %cst_14 = arith.constant 0.000000e+00 : f32
    %25 = vector.broadcast %cst_14 : f32 to vector<4x512xf32>
    %26 = arith.maximumf %24, %25 : vector<4x512xf32>
    %c0_15 = arith.constant 0 : index
    %c0_16 = arith.constant 0 : index
    %27 = vector.load %arg5[%c0_15, %c0_16] : memref<4x8xf32, #tpu.memory_space<vmem>>, vector<4x8xf32>
    %c0_17 = arith.constant 0 : index
    %c0_18 = arith.constant 0 : index
    %28 = vector.load %arg6[%c0_17, %c0_18] : memref<4x1xf32, #tpu.memory_space<vmem>>, vector<4x1xf32>
    %cst_19 = arith.constant dense<0.000000e+00> : vector<4x512xf32>
    %29 = tpu.matmul %27, %3, %cst_19 {dimension_numbers = #tpu.dot_dimension_numbers<[1], [0], [0], [1], [0, 0, 1, 1], [], []>} : vector<4x8xf32>, vector<8x512xf32>, vector<4x512xf32> -> vector<4x512xf32>
    %30 = vector.broadcast %28 : vector<4x1xf32> to vector<4x512xf32>
    %31 = arith.addf %29, %30 : vector<4x512xf32>
    %cst_20 = arith.constant dense<0.000000e+00> : vector<4xf32>
    %32 = vector.multi_reduction <add>, %31, %cst_20 [1] : vector<4x512xf32> to vector<4xf32>
    %33 = vector.shape_cast %32 : vector<4xf32> to vector<4x1xf32>
    %cst_21 = arith.constant 0.001953125 : f32
    %34 = vector.broadcast %cst_21 : f32 to vector<4x1xf32>
    %35 = arith.mulf %33, %34 : vector<4x1xf32>
    %36 = vector.broadcast %35 : vector<4x1xf32> to vector<4x512xf32>
    %37 = arith.subf %31, %36 : vector<4x512xf32>
    %38 = arith.mulf %37, %37 : vector<4x512xf32>
    %cst_22 = arith.constant dense<0.000000e+00> : vector<4xf32>
    %39 = vector.multi_reduction <add>, %38, %cst_22 [1] : vector<4x512xf32> to vector<4xf32>
    %40 = vector.shape_cast %39 : vector<4xf32> to vector<4x1xf32>
    %cst_23 = arith.constant 0.001953125 : f32
    %41 = vector.broadcast %cst_23 : f32 to vector<4x1xf32>
    %42 = arith.mulf %40, %41 : vector<4x1xf32>
    %cst_24 = arith.constant 9.99999974E-6 : f32
    %43 = vector.broadcast %cst_24 : f32 to vector<4x1xf32>
    %44 = arith.addf %42, %43 : vector<4x1xf32>
    %45 = math.rsqrt %44 : vector<4x1xf32>
    %46 = vector.broadcast %45 : vector<4x1xf32> to vector<4x512xf32>
    %47 = arith.mulf %37, %46 : vector<4x512xf32>
    %cst_25 = arith.constant 0.000000e+00 : f32
    %48 = vector.broadcast %cst_25 : f32 to vector<4x512xf32>
    %49 = arith.maximumf %47, %48 : vector<4x512xf32>
    %50 = arith.addf %26, %49 : vector<4x512xf32>
    %c0_26 = arith.constant 0 : index
    %c0_27 = arith.constant 0 : index
    %51 = vector.load %arg7[%c0_26, %c0_27] : memref<4x1xf32, #tpu.memory_space<vmem>>, vector<4x1xf32>
    %52 = vector.broadcast %51 : vector<4x1xf32> to vector<4x512xf32>
    %53 = arith.mulf %50, %52 : vector<4x512xf32>
    %cst_28 = arith.constant dense<0.000000e+00> : vector<512xf32>
    %54 = vector.multi_reduction <add>, %53, %cst_28 [0] : vector<4x512xf32> to vector<512xf32>
    %55 = vector.shape_cast %54 : vector<512xf32> to vector<1x512xf32>
    %c0_29 = arith.constant 0 : index
    %c0_30 = arith.constant 0 : index
    %56 = vector.load %arg8[%c0_29, %c0_30] : memref<1x1xf32, #tpu.memory_space<vmem>>, vector<1x1xf32>
    %57 = vector.broadcast %56 : vector<1x1xf32> to vector<1x512xf32>
    %58 = arith.addf %55, %57 : vector<1x512xf32>
    %cst_31 = arith.constant dense<0.000000e+00> : vector<1xf32>
    %59 = vector.multi_reduction <add>, %58, %cst_31 [1] : vector<1x512xf32> to vector<1xf32>
    %60 = vector.shape_cast %59 : vector<1xf32> to vector<1x1xf32>
    %cst_32 = arith.constant 0.001953125 : f32
    %61 = vector.broadcast %cst_32 : f32 to vector<1x1xf32>
    %62 = arith.mulf %60, %61 : vector<1x1xf32>
    %63 = vector.broadcast %62 : vector<1x1xf32> to vector<1x512xf32>
    %64 = arith.subf %58, %63 : vector<1x512xf32>
    %65 = arith.mulf %64, %64 : vector<1x512xf32>
    %cst_33 = arith.constant dense<0.000000e+00> : vector<1xf32>
    %66 = vector.multi_reduction <add>, %65, %cst_33 [1] : vector<1x512xf32> to vector<1xf32>
    %67 = vector.shape_cast %66 : vector<1xf32> to vector<1x1xf32>
    %cst_34 = arith.constant 0.001953125 : f32
    %68 = vector.broadcast %cst_34 : f32 to vector<1x1xf32>
    %69 = arith.mulf %67, %68 : vector<1x1xf32>
    %cst_35 = arith.constant 9.99999974E-6 : f32
    %70 = vector.broadcast %cst_35 : f32 to vector<1x1xf32>
    %71 = arith.addf %69, %70 : vector<1x1xf32>
    %72 = math.rsqrt %71 : vector<1x1xf32>
    %73 = vector.broadcast %72 : vector<1x1xf32> to vector<1x512xf32>
    %74 = arith.mulf %64, %73 : vector<1x512xf32>
    %75 = arith.negf %74 : vector<1x512xf32>
    %76 = math.exp %75 : vector<1x512xf32>
    %cst_36 = arith.constant 1.000000e+00 : f32
    %77 = vector.broadcast %cst_36 : f32 to vector<1x512xf32>
    %78 = arith.addf %77, %76 : vector<1x512xf32>
    %79 = arith.divf %77, %78 : vector<1x512xf32>
    %cst_37 = arith.constant 1.000000e+00 : f32
    %80 = vector.broadcast %cst_37 : f32 to vector<1x512xf32>
    %81 = arith.addf %79, %80 : vector<1x512xf32>
    %82 = vector.broadcast %81 : vector<1x512xf32> to vector<8x512xf32>
    %83 = arith.mulf %1, %82 : vector<8x512xf32>
    %c0_38 = arith.constant 0 : index
    %c0_39 = arith.constant 0 : index
    %c0_40 = arith.constant 0 : index
    %84 = vector.load %arg9[%c0_38, %c0_39, %c0_40] : memref<1x8x512xf32, #tpu.memory_space<vmem>>, vector<1x8x512xf32>
    %85 = vector.shape_cast %84 : vector<1x8x512xf32> to vector<8x512xf32>
    %86 = vector.shape_cast %83 : vector<8x512xf32> to vector<1x8x512xf32>
    tpu.vector_store %arg9[%c0_38, %c0_39, %c0_40], %86 {strides = array<i32>} : memref<1x8x512xf32, #tpu.memory_space<vmem>>, vector<1x8x512xf32>,
    return
  }
  func.func @transform_0(%arg0: i32) -> (i32, i32, i32) {
    %c0_i32 = arith.constant 0 : i32
    %c0_i32_0 = arith.constant 0 : i32
    %c0_i32_1 = arith.constant 0 : i32
    return %arg0, %c0_i32, %c0_i32_0 : i32, i32, i32
  }
  func.func @transform_1(%arg0: i32) -> (i32, i32, i32) {
    %c0_i32 = arith.constant 0 : i32
    %c0_i32_0 = arith.constant 0 : i32
    %c0_i32_1 = arith.constant 0 : i32
    return %arg0, %c0_i32, %c0_i32_0 : i32, i32, i32
  }
  func.func @transform_2(%arg0: i32) -> (i32, i32) {
    %c0_i32 = arith.constant 0 : i32
    %c0_i32_0 = arith.constant 0 : i32
    %c0_i32_1 = arith.constant 0 : i32
    return %c0_i32, %c0_i32_0 : i32, i32
  }
  func.func @transform_3(%arg0: i32) -> (i32, i32) {
    %c0_i32 = arith.constant 0 : i32
    %c0_i32_0 = arith.constant 0 : i32
    %c0_i32_1 = arith.constant 0 : i32
    return %c0_i32, %c0_i32_0 : i32, i32
  }
  func.func @transform_4(%arg0: i32) -> (i32, i32) {
    %c0_i32 = arith.constant 0 : i32
    %c0_i32_0 = arith.constant 0 : i32
    %c0_i32_1 = arith.constant 0 : i32
    return %c0_i32, %c0_i32_0 : i32, i32
  }
  func.func @transform_5(%arg0: i32) -> (i32, i32) {
    %c0_i32 = arith.constant 0 : i32
    %c0_i32_0 = arith.constant 0 : i32
    %c0_i32_1 = arith.constant 0 : i32
    return %c0_i32, %c0_i32_0 : i32, i32
  }
  func.func @transform_6(%arg0: i32) -> (i32, i32) {
    %c0_i32 = arith.constant 0 : i32
    %c0_i32_0 = arith.constant 0 : i32
    %c0_i32_1 = arith.constant 0 : i32
    return %c0_i32, %c0_i32_0 : i32, i32
  }
  func.func @transform_7(%arg0: i32) -> (i32, i32) {
    %c0_i32 = arith.constant 0 : i32
    %c0_i32_0 = arith.constant 0 : i32
    %c0_i32_1 = arith.constant 0 : i32
    return %c0_i32, %c0_i32_0 : i32, i32
  }
  func.func @transform_8(%arg0: i32) -> (i32, i32, i32) {
    %c0_i32 = arith.constant 0 : i32
    %c0_i32_0 = arith.constant 0 : i32
    %c0_i32_1 = arith.constant 0 : i32
    return %arg0, %c0_i32, %c0_i32_0 : i32, i32, i32
  }
}

</mosaic_0001>

<bundles_post_ra>
// kernel: swift_attn_gate.1
= control target key start
LH: loop header
LB: loop body
LE: loop exit
PB: predicated region body
PF: predicated region fallthrough
CT: control target
= control target key end

     0   :  { %s973_s29 = smov 0   ;;  %s1073_s0 = inlined_call_operand.vmem [shape: f32[2,8,512], index: 0, kind: input, shape index: {}]   ;;  %s1074_s1 = inlined_call_operand.vmem [shape: f32[2,8,512], index: 1, kind: input, shape index: {}]   ;;  %s1075_s2 = inlined_call_operand.vmem [shape: f32[4,8], index: 2, kind: input, shape index: {}]   ;;  %s1076_s3 = inlined_call_operand.vmem [shape: f32[4,1], index: 3, kind: input, shape index: {}]   ;;  %s1077_s4 = inlined_call_operand.vmem [shape: f32[4,8], index: 4, kind: input, shape index: {}]   ;;  %s1078_s5 = inlined_call_operand.vmem [shape: f32[4,1], index: 5, kind: input, shape index: {}]   ;;  %s1079_s6 = inlined_call_operand.vmem [shape: f32[4,1], index: 6, kind: input, shape index: {}]   ;;  %s1080_s7 = inlined_call_operand.<no memory space> [shape: f32[1,1], index: 7, kind: input, shape index: {}]   ;;  %s1081_s8 = inlined_call_operand.vmem [shape: f32[2,8,512], index: 8, kind: output, shape index: {}]  }
   0x1   :  { %v13_v0 = vstv %s1080_s7 }
   0x2   :  { %14 = vst [vmem:[#allocation2] sm:$0x1] %v13_v0 }
   0x3 LB: > { %s855_s30 = sadd.s32 4294967295, %s922_s29   ;;  %p859_p0 = scmp.ge.s32.totalorder %s922_s29, 1  ;;  %s922_s29 = sphi %s973_s29, %s20_s29  }
   0x4   : > { %p274_p1 = scmp.lt.s32.totalorder %s922_s29, 3 }
   0x6   : > { %p275_p2 = pnand %p859_p0, %p274_p1 }
   0x7   : > { %p313_p3 = scmp.lt.s32.totalorder (!%p275_p2), %s855_s30, 1 }
   0x8   : > { %278 = sbr.rel (%p275_p2) target bundleno = 767 (0x2ff), region = 52 }
   0xd   : > { %v337_v1 = vld [vmem:[%s1076_s3] sm:$0xf]  ;;  %v924_v2 = vmov 0   ;;  %s1087_s30 = smov (!%p313_p3, %s855_s30), 1  ;;  %vm343_vm0 = vcmask 64512   ;;  %vm427_vm1 = vcmask 1043456  }
   0xe   : > { %892 = vset.pattern.permute.xlu0 %v924_v2  ;;  %893 = vset.pattern.permute.xlu1 %v924_v2  ;;  %s984_s7 = sshll.u32 %s1087_s30, 5  ;;  %v336_v3 = vld [vmem:[%s1075_s2] sm:$0xf] }
   0xf   : > { %340 = vperm.xlu0 %892, %v337_v1   ;;  %s317_s13 = scalar_lea.vmem %s1073_s0, %s984_s7  ;;  %s322_s18 = scalar_lea.vmem %s1074_s1, %s984_s7  ;;  %v476_v12 = vld [vmem:[%s1078_s5] sm:$0xf] }
  0x10   : > { %v993_v4 = vld [vmem:[%s317_s13] sm:$0xff]  ;;  %v995_v5 = vld [vmem:[%s317_s13 + $0x8] sm:$0xff]  ;;  %v997_v6 = vld [vmem:[%s317_s13 + $0x10] sm:$0xff]  ;;  %s327_s27 = scalar_lea.vmem %s1081_s8, %s984_s7 }
  0x11   : > { %362 = vmatpush.msra.mxu0 %v993_v4  ;;  %382 = vmatpush.msra.mxu1 %v995_v5  ;;  %v1005_v7 = vld [vmem:[%s317_s13 + $0x18] sm:$0xff]  ;;  %v334_v8 = vld [vmem:[%s322_s18 + $0x10] sm:$0xff]  ;;  %v332_v10 = vld [vmem:[%s322_s18] sm:$0xff] }
  0x12   : > { %402 = vmatpush.msra.mxu2 %v997_v6  ;;  %422 = vmatpush.msra.mxu3 %v1005_v7  ;;  %v335_v9 = vld [vmem:[%s322_s18 + $0x18] sm:$0xff]  ;;  %v333_v11 = vld [vmem:[%s322_s18 + $0x8] sm:$0xff]  ;;  %v475_v13 = vld [vmem:[%s1077_s4] sm:$0xf] }
  0x13   : > { %866 = vmatmul.msk.f32.vlgmr.msra.gmra.mxu0 %vm343_vm0, %v336_v3  ;;  %867 = vmatmul.msk.f32.vlgmr.msra.gmra.mxu1 %vm343_vm0, %v336_v3  ;;  %v616_v14 = vld [vmem:[%s1079_s6] sm:$0xf] }
  0x14   : > { %868 = vmatmul.msk.f32.vlgmr.msra.gmra.mxu2 %vm343_vm0, %v336_v3  ;;  %869 = vmatmul.msk.f32.vlgmr.msra.gmra.mxu3 %vm343_vm0, %v336_v3  ;;  %v654_v47 = vld [vmem:[#allocation2] sm:$0x1] }
  0x15   : > { %540 = vmatpush.msrb.mxu2 %v334_v8  ;;  %560 = vmatpush.msrb.mxu3 %v335_v9 }
  0x16   : > { %500 = vmatpush.msrb.mxu0 %v332_v10  ;;  %520 = vmatpush.msrb.mxu1 %v333_v11 }
  0x17   : > { %479 = vperm.xlu0 %892, %v476_v12  }
  0x1b   : > { %870 = vmatmul.msk.f32.vlgmr.msrb.gmra.mxu0 %vm343_vm0, %v475_v13  ;;  %871 = vmatmul.msk.f32.vlgmr.msrb.gmra.mxu1 %vm343_vm0, %v475_v13 }
  0x1c   : > { %872 = vmatmul.msk.f32.vlgmr.msrb.gmra.mxu2 %vm343_vm0, %v475_v13  ;;  %873 = vmatmul.msk.f32.vlgmr.msrb.gmra.mxu3 %vm343_vm0, %v475_v13 }
  0x1f   : > { %619 = vperm.xlu0 %892, %v616_v14  }
  0x81   : > { %v341_v15 = vpop.permute.xlu0 %340 }
  0x89   : > { %v480_v29 = vpop.permute.xlu0 %479 }
  0x90   : > { %v364_v16 = vpop.f32.mrf.mxu0  ;;  %v384_v17 = vpop.f32.mrf.mxu1 }
  0x91   : > { %v365_v18 = vadd.f32 %v364_v16, %v341_v15  ;;  %v385_v19 = vadd.f32 %v384_v17, %v341_v15 }
  0x93   : > { %v428_v20 = vsel %vm427_vm1, %v365_v18, 0.0  ;;  %v429_v21 = vsel %vm427_vm1, %v385_v19, 0.0 }
  0x94   : > { %v430_v22 = vadd.f32 %v429_v21, %v428_v20 }
  0x97   : > { %v404_v23 = vpop.f32.mrf.mxu2  ;;  %v424_v24 = vpop.f32.mrf.mxu3 }
  0x98   : > { %v405_v25 = vadd.f32 %v404_v23, %v341_v15  ;;  %v425_v26 = vadd.f32 %v424_v24, %v341_v15  ;;  %v502_v27 = vpop.f32.mrf.mxu0  ;;  %v522_v28 = vpop.f32.mrf.mxu1 }
  0x99   : > { %v503_v31 = vadd.f32 %v502_v27, %v480_v29  ;;  %v523_v32 = vadd.f32 %v522_v28, %v480_v29 }
  0x9a   : > { %v431_v30 = vsel %vm427_vm1, %v405_v25, 0.0  ;;  %v433_v34 = vsel %vm427_vm1, %v425_v26, 0.0 }
  0x9b   : > { %v432_v33 = vadd.f32 %v431_v30, %v430_v22  ;;  %v565_v36 = vsel %vm427_vm1, %v503_v31, 0.0  ;;  %v566_v37 = vsel %vm427_vm1, %v523_v32, 0.0 }
  0x9c   : > { %v567_v42 = vadd.f32 %v566_v37, %v565_v36 }
  0x9d   : > { %v434_v35 = vadd.f32 %v433_v34, %v432_v33 }
  0x9f   : > { %v542_v38 = vpop.f32.mrf.mxu2  ;;  %v562_v39 = vpop.f32.mrf.mxu3  ;;  %435 = vadd.xlane.f32.xlu1 %v434_v35 }
  0xa0   : > { %v543_v40 = vadd.f32 %v542_v38, %v480_v29  ;;  %v563_v41 = vadd.f32 %v562_v39, %v480_v29 }
  0xa2   : > { %v568_v43 = vsel %vm427_vm1, %v543_v40, 0.0  ;;  %v570_v45 = vsel %vm427_vm1, %v563_v41, 0.0 }
  0xa3   : > { %v569_v44 = vadd.f32 %v568_v43, %v567_v42 }
  0xa5   : > { %v571_v46 = vadd.f32 %v570_v45, %v569_v44 }
  0xa7   : > { %572 = vadd.xlane.f32.xlu1 %v571_v46 }
  0xc0   : > { %657 = vperm.xlu1 %893, %v654_v47  }
 0x112   : > { %v436_v48 = vpop.xlane.xlu1 %435 }
 0x113   : > { %v437_v49 = vmul.f32 0.001953125, %v436_v48 }
 0x115   : > { %v438_v50 = vsub.f32 %v365_v18, %v437_v49  ;;  %v439_v51 = vsub.f32 %v385_v19, %v437_v49  ;;  %v440_v52 = vsub.f32 %v405_v25, %v437_v49  ;;  %v441_v53 = vsub.f32 %v425_v26, %v437_v49 }
 0x117   : > { %v442_v54 = vmul.f32 %v438_v50, %v438_v50  ;;  %v443_v55 = vmul.f32 %v439_v51, %v439_v51  ;;  %v444_v56 = vmul.f32 %v440_v52, %v440_v52  ;;  %v445_v57 = vmul.f32 %v441_v53, %v441_v53 }
 0x119   : > { %v446_v58 = vsel %vm427_vm1, %v442_v54, 0.0  ;;  %v447_v59 = vsel %vm427_vm1, %v443_v55, 0.0  ;;  %v449_v63 = vsel %vm427_vm1, %v444_v56, 0.0  ;;  %v451_v1 = vsel %vm427_vm1, %v445_v57, 0.0 }
 0x11a   : > { %v573_v60 = vpop.xlane.xlu1 %572  ;;  %v448_v61 = vadd.f32 %v447_v59, %v446_v58 }
 0x11b   : > { %v574_v62 = vmul.f32 0.001953125, %v573_v60 }
 0x11c   : > { %v450_v0 = vadd.f32 %v449_v63, %v448_v61 }
 0x11d   : > { %v575_v2 = vsub.f32 %v503_v31, %v574_v62  ;;  %v576_v3 = vsub.f32 %v523_v32, %v574_v62  ;;  %v577_v8 = vsub.f32 %v543_v40, %v574_v62  ;;  %v578_v9 = vsub.f32 %v563_v41, %v574_v62 }
 0x11e   : > { %v452_v10 = vadd.f32 %v451_v1, %v450_v0 }
 0x11f   : > { %v579_v11 = vmul.f32 %v575_v2, %v575_v2  ;;  %v580_v12 = vmul.f32 %v576_v3, %v576_v3  ;;  %v581_v13 = vmul.f32 %v577_v8, %v577_v8  ;;  %v582_v14 = vmul.f32 %v578_v9, %v578_v9 }
 0x120   : > { %453 = vadd.xlane.f32.xlu2 %v452_v10 }
 0x121   : > { %v583_v15 = vsel %vm427_vm1, %v579_v11, 0.0  ;;  %v584_v16 = vsel %vm427_vm1, %v580_v12, 0.0  ;;  %v586_v18 = vsel %vm427_vm1, %v581_v13, 0.0  ;;  %v588_v20 = vsel %vm427_vm1, %v582_v14, 0.0 }
 0x122   : > { %v585_v17 = vadd.f32 %v584_v16, %v583_v15 }
 0x124   : > { %v587_v19 = vadd.f32 %v586_v18, %v585_v17 }
 0x126   : > { %v589_v21 = vadd.f32 %v588_v20, %v587_v19 }
 0x128   : > { %590 = vadd.xlane.f32.xlu2 %v589_v21 }
 0x132   : > { %v658_v19 = vpop.permute.xlu1 %657 }
 0x193   : > { %v454_v22 = vpop.xlane.xlu2 %453 }
 0x194   : > { %v455_v23 = vmul.f32 0.001953125, %v454_v22 }
 0x196   : > { %v456_v24 = vadd.f32 1e-05, %v455_v23 }
 0x198   : > { %894 = vrsqrt.f32 %v456_v24  ;;  %vm463_vm3 = vweird.f32 %v456_v24 }
 0x19b   : > { %v591_v25 = vpop.xlane.xlu2 %590 }
 0x19c   : > { %v592_v26 = vmul.f32 0.001953125, %v591_v25 }
 0x19e   : > { %v895_v27 = vpop.eup %894  ;;  %v593_v28 = vadd.f32 1e-05, %v592_v26 }
 0x19f   : > { %v458_v29 = vmul.f32 %v895_v27, %v456_v24  ;;  %vm464_vm2 = vweird.f32 %v895_v27 }
 0x1a0   : > { %896 = vrsqrt.f32 %v593_v28  ;;  %vm465_vm4 = vmor %vm463_vm3, %vm464_vm2  ;;  %vm600_vm6 = vweird.f32 %v593_v28 }
 0x1a1   : > { %v459_v30 = vmul.f32 %v895_v27, %v458_v29 }
 0x1a3   : > { %v460_v31 = vmul.f32 0.5, %v459_v30 }
 0x1a5   : > { %v461_v32 = vsub.f32 1.5, %v460_v31 }
 0x1a6   : > { %v897_v33 = vpop.eup %896 }
 0x1a7   : > { %v462_v34 = vmul.f32 %v895_v27, %v461_v32  ;;  %v595_v35 = vmul.f32 %v897_v33, %v593_v28  ;;  %vm601_vm5 = vweird.f32 %v897_v33  ;;  %v660_v28 = vperm.slane %v658_v19, 0 }
 0x1a8   : > { %vm602_vm7 = vmor %vm600_vm6, %vm601_vm5 }
 0x1a9   : > { %v596_v36 = vmul.f32 %v897_v33, %v595_v35  ;;  %v466_v37 = vsel %vm465_vm4, %v895_v27, %v462_v34 }
 0x1aa   : > { %v467_v40 = vmul.f32 %v466_v37, %v438_v50  ;;  %v468_v41 = vmul.f32 %v466_v37, %v439_v51  ;;  %v469_v42 = vmul.f32 %v466_v37, %v440_v52  ;;  %v470_v43 = vmul.f32 %v466_v37, %v441_v53  ;;  %v620_v53 = vpop.permute.xlu0 %619 }
 0x1ab   : > { %v597_v38 = vmul.f32 0.5, %v596_v36 }
 0x1ac   : > { %v471_v54 = vmax.f32 %v467_v40, 0.0  ;;  %v472_v55 = vmax.f32 %v468_v41, 0.0  ;;  %v473_v56 = vmax.f32 %v469_v42, 0.0  ;;  %v474_v57 = vmax.f32 %v470_v43, 0.0 }
 0x1ad   : > { %v598_v39 = vsub.f32 1.5, %v597_v38 }
 0x1af   : > { %v599_v44 = vmul.f32 %v897_v33, %v598_v39 }
 0x1b1   : > { %v603_v45 = vsel %vm602_vm7, %v897_v33, %v599_v44 }
 0x1b2   : > { %v604_v46 = vmul.f32 %v603_v45, %v575_v2  ;;  %v605_v47 = vmul.f32 %v603_v45, %v576_v3  ;;  %v606_v48 = vmul.f32 %v603_v45, %v577_v8  ;;  %v607_v49 = vmul.f32 %v603_v45, %v578_v9 }
 0x1b4   : > { %v608_v58 = vmax.f32 %v604_v46, 0.0  ;;  %v609_v59 = vmax.f32 %v605_v47, 0.0  ;;  %v610_v60 = vmax.f32 %v606_v48, 0.0  ;;  %v611_v61 = vmax.f32 %v607_v49, 0.0 }
 0x1b6   : > { %v612_v50 = vadd.f32 %v608_v58, %v471_v54  ;;  %v613_v62 = vadd.f32 %v609_v59, %v472_v55  ;;  %v614_v51 = vadd.f32 %v610_v60, %v473_v56  ;;  %v615_v52 = vadd.f32 %v611_v61, %v474_v57 }
 0x1b8   : > { %v622_v63 = vmul.f32 %v620_v53, %v612_v50  ;;  %v623_v0 = vmul.f32 %v620_v53, %v613_v62  ;;  %v624_v1 = vmul.f32 %v620_v53, %v614_v51  ;;  %v625_v2 = vmul.f32 %v620_v53, %v615_v52 }
 0x1ba   : > { %v626_v3 = vsel %vm427_vm1, %v622_v63, 0.0  ;;  %v633_v8 = vsel %vm427_vm1, %v623_v0, 0.0  ;;  %v640_v9 = vsel %vm427_vm1, %v624_v1, 0.0  ;;  %v647_v10 = vsel %vm427_vm1, %v625_v2, 0.0 }
 0x1bb   : > { %v627_v11 = vrot.slane %v626_v3, 4  ;;  %v634_v12 = vrot.slane %v633_v8, 4  ;;  %v641_v13 = vrot.slane %v640_v9, 4  ;;  %v648_v14 = vrot.slane %v647_v10, 4 }
 0x1bd   : > { %v628_v15 = vadd.f32 %v627_v11, %v626_v3  ;;  %v635_v16 = vadd.f32 %v634_v12, %v633_v8  ;;  %v642_v17 = vadd.f32 %v641_v13, %v640_v9  ;;  %v649_v18 = vadd.f32 %v648_v14, %v647_v10 }
 0x1bf   : > { %v629_v20 = vrot.slane %v628_v15, 2  ;;  %v636_v21 = vrot.slane %v635_v16, 2  ;;  %v643_v22 = vrot.slane %v642_v17, 2  ;;  %v650_v23 = vrot.slane %v649_v18, 2 }
 0x1c1   : > { %v630_v24 = vadd.f32 %v629_v20, %v628_v15  ;;  %v637_v25 = vadd.f32 %v636_v21, %v635_v16  ;;  %v644_v26 = vadd.f32 %v643_v22, %v642_v17  ;;  %v651_v27 = vadd.f32 %v650_v23, %v649_v18 }
 0x1c3   : > { %v631_v29 = vrot.slane %v630_v24, 1  ;;  %v638_v30 = vrot.slane %v637_v25, 1  ;;  %v645_v31 = vrot.slane %v644_v26, 1  ;;  %v652_v32 = vrot.slane %v651_v27, 1 }
 0x1c5   : > { %v632_v33 = vadd.f32 %v631_v29, %v630_v24  ;;  %v639_v34 = vadd.f32 %v638_v30, %v637_v25  ;;  %v646_v35 = vadd.f32 %v645_v31, %v644_v26  ;;  %v653_v36 = vadd.f32 %v652_v32, %v651_v27 }
 0x1c7   : > { %v661_v37 = vadd.f32 %v660_v28, %v632_v33  ;;  %v662_v38 = vadd.f32 %v660_v28, %v639_v34  ;;  %v663_v39 = vadd.f32 %v660_v28, %v646_v35  ;;  %v664_v41 = vadd.f32 %v660_v28, %v653_v36 }
 0x1c9   : > { %v665_v40 = vadd.f32 %v662_v38, %v661_v37 }
 0x1cb   : > { %v666_v42 = vadd.f32 %v665_v40, %v663_v39 }
 0x1cd   : > { %v667_v43 = vadd.f32 %v666_v42, %v664_v41 }
 0x1cf   : > { %668 = vadd.xlane.f32.xlu2 %v667_v43 }
 0x242   : > { %v669_v44 = vpop.xlane.xlu2 %668 }
 0x243   : > { %v670_v45 = vmul.f32 0.001953125, %v669_v44 }
 0x245   : > { %v671_v46 = vsub.f32 %v661_v37, %v670_v45  ;;  %v672_v47 = vsub.f32 %v662_v38, %v670_v45  ;;  %v673_v48 = vsub.f32 %v663_v39, %v670_v45  ;;  %v674_v49 = vsub.f32 %v664_v41, %v670_v45 }
 0x247   : > { %v675_v54 = vmul.f32 %v671_v46, %v671_v46  ;;  %v676_v55 = vmul.f32 %v672_v47, %v672_v47  ;;  %v677_v56 = vmul.f32 %v673_v48, %v673_v48  ;;  %v678_v58 = vmul.f32 %v674_v49, %v674_v49 }
 0x249   : > { %v679_v57 = vadd.f32 %v676_v55, %v675_v54 }
 0x24b   : > { %v680_v59 = vadd.f32 %v679_v57, %v677_v56 }
 0x24d   : > { %v681_v60 = vadd.f32 %v680_v59, %v678_v58 }
 0x24f   : > { %682 = vadd.xlane.f32.xlu0 %v681_v60 }
 0x2c2   : > { %v683_v61 = vpop.xlane.xlu0 %682 }
 0x2c3   : > { %v684_v50 = vmul.f32 0.001953125, %v683_v61 }
 0x2c5   : > { %v685_v62 = vadd.f32 1e-05, %v684_v50 }
 0x2c7   : > { %898 = vrsqrt.f32 %v685_v62  ;;  %vm692_vm9 = vweird.f32 %v685_v62 }
 0x2cd   : > { %v899_v51 = vpop.eup %898 }
 0x2ce   : > { %v687_v52 = vmul.f32 %v899_v51, %v685_v62  ;;  %vm693_vm8 = vweird.f32 %v899_v51 }
 0x2cf   : > { %vm694_vm10 = vmor %vm692_vm9, %vm693_vm8 }
 0x2d0   : > { %v688_v53 = vmul.f32 %v899_v51, %v687_v52 }
 0x2d2   : > { %v689_v63 = vmul.f32 0.5, %v688_v53 }
 0x2d4   : > { %v690_v0 = vsub.f32 1.5, %v689_v63 }
 0x2d6   : > { %v691_v1 = vmul.f32 %v899_v51, %v690_v0 }
 0x2d8   : > { %v695_v2 = vsel %vm694_vm10, %v899_v51, %v691_v1 }
 0x2d9   : > { %v696_v3 = vmul.f32 %v695_v2, %v671_v46  ;;  %v697_v8 = vmul.f32 %v695_v2, %v672_v47  ;;  %v698_v9 = vmul.f32 %v695_v2, %v673_v48  ;;  %v699_v10 = vmul.f32 %v695_v2, %v674_v49 }
 0x2db   : > { %v874_v11 = vmul.f32 -1.442695, %v696_v3  ;;  %v875_v12 = vmul.f32 -1.442695, %v697_v8  ;;  %v876_v13 = vmul.f32 -1.442695, %v698_v9 }
 0x2dc   : > { %v877_v14 = vmul.f32 -1.442695, %v699_v10 }
 0x2dd   : > { %900 = vpow2.f32 %v874_v11 }
 0x2de   : > { %902 = vpow2.f32 %v875_v12 }
 0x2df   : > { %904 = vpow2.f32 %v876_v13 }
 0x2e0   : > { %906 = vpow2.f32 %v877_v14 }
 0x2e3   : > { %v901_v15 = vpop.eup %900 }
 0x2e4   : > { %v903_v16 = vpop.eup %902  ;;  %v712_v17 = vadd.f32 1.0, %v901_v15 }
 0x2e5   : > { %v905_v18 = vpop.eup %904  ;;  %v713_v19 = vadd.f32 1.0, %v903_v16 }
 0x2e6   : > { %v907_v20 = vpop.eup %906  ;;  %v714_v21 = vadd.f32 1.0, %v905_v18  ;;  %908 = vrcp.f32 %v712_v17  ;;  %v725_v23 = vand.u32 2147483647, %v712_v17  ;;  %v727_v24 = vand.u32 2147483648, %v712_v17 }
 0x2e7   : > { %v715_v22 = vadd.f32 1.0, %v907_v20  ;;  %910 = vrcp.f32 %v713_v19  ;;  %vm721_vm11 = vweird.f32 %v712_v17  ;;  %vm736_vm12 = vweird.f32 %v713_v19 }
 0x2e8   : > { %912 = vrcp.f32 %v714_v21  ;;  %v740_v30 = vand.u32 2147483647, %v713_v19  ;;  %v742_v31 = vand.u32 2147483648, %v713_v19  ;;  %vm1046_vm13 = vcmp.eq.f32.partialorder %v725_v23, 8.507059e+37 }
 0x2e9   : > { %914 = vrcp.f32 %v715_v22  ;;  %v728_v34 = vor.u32 1.1754944e-38, %v727_v24  ;;  %vm751_vm14 = vweird.f32 %v714_v21  ;;  %v755_v38 = vand.u32 2147483647, %v714_v21 }
 0x2ea   : > { %v757_v39 = vand.u32 2147483648, %v714_v21  ;;  %vm1050_vm1 = vcmp.eq.f32.partialorder %v740_v30, 8.507059e+37  ;;  %v743_v45 = vor.u32 1.1754944e-38, %v742_v31  ;;  %vm766_vm4 = vweird.f32 %v715_v22 }
 0x2eb   : > { %v770_v54 = vand.u32 2147483647, %v715_v22  ;;  %v772_v55 = vand.u32 2147483648, %v715_v22  ;;  %vm756_vm8 = vcmp.eq.f32.partialorder %v755_v38, 8.507059e+37 }
 0x2ec   : > { %v909_v25 = vpop.eup %908  ;;  %v758_v61 = vor.u32 1.1754944e-38, %v757_v39 }
 0x2ed   : > { %v911_v26 = vpop.eup %910  ;;  %v717_v27 = vmul.f32 %v909_v25, %v712_v17  ;;  %vm722_vm15 = vweird.f32 %v909_v25  ;;  %v773_v63 = vor.u32 1.1754944e-38, %v772_v55  ;;  %vm771_vm10 = vcmp.eq.f32.partialorder %v770_v54, 8.507059e+37 }
 0x2ee   : > { %v913_v28 = vpop.eup %912  ;;  %v732_v29 = vmul.f32 %v911_v26, %v713_v19  ;;  %vm737_vm0 = vweird.f32 %v911_v26  ;;  %vm723_vm3 = vmor %vm721_vm11, %vm722_vm15 }
 0x2ef   : > { %v718_v32 = vsub.f32 1.0, %v717_v27  ;;  %v747_v35 = vmul.f32 %v913_v28, %v714_v21  ;;  %v915_v36 = vpop.eup %914  ;;  %vm752_vm2 = vweird.f32 %v913_v28  ;;  %vm738_vm5 = vmor %vm736_vm12, %vm737_vm0 }
 0x2f0   : > { %v733_v37 = vsub.f32 1.0, %v732_v29  ;;  %v762_v42 = vmul.f32 %v915_v36, %v715_v22  ;;  %vm767_vm6 = vweird.f32 %v915_v36  ;;  %vm753_vm7 = vmor %vm751_vm14, %vm752_vm2 }
 0x2f1   : > { %v719_v40 = vmul.f32 %v909_v25, %v718_v32  ;;  %v748_v41 = vsub.f32 1.0, %v747_v35  ;;  %vm768_vm9 = vmor %vm766_vm4, %vm767_vm6 }
 0x2f2   : > { %v734_v43 = vmul.f32 %v911_v26, %v733_v37  ;;  %v763_v48 = vsub.f32 1.0, %v762_v42 }
 0x2f3   : > { %v720_v46 = vadd.f32 %v909_v25, %v719_v40  ;;  %v749_v47 = vmul.f32 %v913_v28, %v748_v41 }
 0x2f4   : > { %v735_v49 = vadd.f32 %v911_v26, %v734_v43  ;;  %v764_v58 = vmul.f32 %v915_v36, %v763_v48 }
 0x2f5   : > { %v724_v56 = vsel %vm723_vm3, %v909_v25, %v720_v46  ;;  %v750_v57 = vadd.f32 %v913_v28, %v749_v47 }
 0x2f6   : > { %v729_v59 = vsel %vm1046_vm13, %v728_v34, %v724_v56  ;;  %v739_v60 = vsel %vm738_vm5, %v911_v26, %v735_v49  ;;  %v765_v51 = vadd.f32 %v915_v36, %v764_v58 }
 0x2f7   : > { %v744_v50 = vsel %vm1050_vm1, %v743_v45, %v739_v60  ;;  %v754_v62 = vsel %vm753_vm7, %v913_v28, %v750_v57  ;;  %v776_v52 = vadd.f32 1.0, %v729_v59 }
 0x2f8   : > { %v759_v53 = vsel %vm756_vm8, %v758_v61, %v754_v62  ;;  %v777_v0 = vadd.f32 1.0, %v744_v50  ;;  %v769_v1 = vsel %vm768_vm9, %v915_v36, %v765_v51 }
 0x2f9   : > { %v778_v2 = vadd.f32 1.0, %v759_v53  ;;  %v780_v3 = vmul.f32 %v776_v52, %v993_v4  ;;  %v774_v8 = vsel %vm771_vm10, %v773_v63, %v769_v1 }
 0x2fa   : > { %v781_v9 = vmul.f32 %v777_v0, %v995_v5  ;;  %v779_v10 = vadd.f32 1.0, %v774_v8 }
 0x2fb   : > { %v782_v11 = vmul.f32 %v778_v2, %v997_v6  ;;  %784 = vst [vmem:[%s327_s27] sm:$0xff] %v780_v3 }
 0x2fc   : > { %785 = vst [vmem:[%s327_s27 + $0x8] sm:$0xff] %v781_v9  ;;  %v783_v12 = vmul.f32 %v779_v10, %v1005_v7 }
 0x2fd   : > { %786 = vst [vmem:[%s327_s27 + $0x10] sm:$0xff] %v782_v11 }
 0x2fe   : > { %787 = vst [vmem:[%s327_s27 + $0x18] sm:$0xff] %v783_v12 }
 0x2ff PF: > { %s20_s29 = sadd.s32 1, %s922_s29  }
 0x300   : > { %p17_p4 = scmp.ge.s32.totalorder %s20_s29, 4  }
 0x302   :  { %19 = sbr.rel (!%p17_p4) target bundleno = 3 (0x3), region = 85 }

</bundles_post_ra>
